<compile_context>
chip_gen: v7x
topology: tpu7x:2x2x1
jax: 0.10.0
libtpu: 0.0.40
codegen_flags: <defaults>
</compile_context>

<pallas_src>
import jax
import jax.numpy as jnp
from jax.experimental import pallas as pl
from jax.experimental.pallas import tpu as pltpu

CHUNK = 512  # lanes processed per inner step (multiple of 128)


def _round_up(a, m):
    return -(-a // m) * m


def mlp_kernel(x_ref,
               w1_ref, b1_ref,
               w2_ref, b2_ref,
               w3_ref, b3_ref,
               w4_ref, b4_ref,
               o_ref):
    """One batch tile, whole network fused.  Batch on lanes, hidden on sublanes.

    The tile is processed in CHUNK-lane column chunks so per-chunk intermediates
    ((64|128, chunk)) stay small instead of materializing (128, TB) slabs in VMEM.
    """
    tb = x_ref.shape[1]
    chunk = min(CHUNK, tb)
    assert tb % chunk == 0, "tile width must be a multiple of the chunk width"
    n_chunks = tb // chunk

    def run_chunk(col):
        x = x_ref[:, pl.ds(col, chunk)]                               # (1, chunk) f32

        # fc1: Linear(1 -> 64).  K=1 contraction == outer product -> VPU broadcast
        # multiply + bias + ReLU (keeps the MXU free); single cast to bf16 for fc2.
        h1 = jnp.maximum(w1_ref[...] * x + b1_ref[...], 0.0)          # (64, chunk) f32
        h1 = h1.astype(jnp.bfloat16)

        # fc2: Linear(64 -> 128).  bf16 MXU matmul, f32 accumulation; epilogue
        # (bias + ReLU) in bf16 so it feeds fc3's MXU matmul with no extra cast.
        h2 = jnp.dot(w2_ref[...], h1, preferred_element_type=jnp.float32)   # (128, chunk)
        h2 = jnp.maximum(h2.astype(jnp.bfloat16) + b2_ref[...], 0.0)        # bf16

        # fc3: Linear(128 -> 64).  bf16 MXU matmul, f32 accumulation; epilogue in f32
        # (its consumer is the f32 fc4 reduce, not another matmul).
        h3 = jnp.dot(w3_ref[...], h2, preferred_element_type=jnp.float32)   # (64, chunk)
        h3 = jnp.maximum(h3 + b3_ref[...], 0.0)                             # f32

        # fc4: Linear(64 -> 1).  N=1 contraction -> weighted sublane reduction (XLU);
        # output stays lane-dense.
        y = jnp.sum(w4_ref[...] * h3, axis=0, keepdims=True) + b4_ref[...]  # (1, chunk)
        o_ref[:, pl.ds(col, chunk)] = y

    if n_chunks == 1:
        run_chunk(0)
    else:
        def body(c, carry):
            run_chunk(pl.multiple_of(c * chunk, chunk))
            return carry
        jax.lax.fori_loop(0, n_chunks, body, 0)


def init_params(key):
    """PyTorch-style Linear init, PyTorch layout: w (out, in), b (out,)."""
    dims = [(1, 64), (64, 128), (128, 64), (64, 1)]  # (in_features, out_features)
    names = ["fc1", "fc2", "fc3", "fc4"]
    params = {}
    for name, (fan_in, fan_out) in zip(names, dims):
        key, kw, kb = jax.random.split(key, 3)
        bound = 1.0 / (fan_in ** 0.5)
        w = jax.random.uniform(kw, (fan_out, fan_in), jnp.float32, -bound, bound)
        b = jax.random.uniform(kb, (fan_out,), jnp.float32, -bound, bound)
        params[name] = (w, b)
    return params


def prepare_params(params):
    """Kernel layout: hidden features on sublanes, no zero padding of the 64-wide dims.
    fc2/fc3 weights (and fc2 bias) are pre-cast to bf16 for the MXU / bf16 epilogue."""
    w1, b1 = params["fc1"]   # (64, 1), (64,)
    w2, b2 = params["fc2"]   # (128, 64), (128,)
    w3, b3 = params["fc3"]   # (64, 128), (64,)
    w4, b4 = params["fc4"]   # (1, 64), (1,)

    w1p = w1.astype(jnp.float32)                        # (64, 1)   f32
    b1p = b1.reshape(64, 1).astype(jnp.float32)         # (64, 1)   f32
    w2p = w2.astype(jnp.bfloat16)                       # (128, 64) bf16
    b2p = b2.reshape(128, 1).astype(jnp.bfloat16)       # (128, 1)  bf16
    w3p = w3.astype(jnp.bfloat16)                       # (64, 128) bf16
    b3p = b3.reshape(64, 1).astype(jnp.float32)         # (64, 1)   f32
    w4p = w4.reshape(1, 64).T.astype(jnp.float32)       # (64, 1)   f32
    b4p = b4.reshape(1, 1).astype(jnp.float32)          # (1, 1)    f32
    return w1p, b1p, w2p, b2p, w3p, b3p, w4p, b4p


def _const_spec(shape):
    # Full-array block, same block every grid step -> DMA'd once, resident in VMEM.
    # (Constant blocks are still double-buffered by default; that costs ~70 KB total
    # here, negligible against the 32 MiB scoped-VMEM budget, so no pl.Buffered(1).)
    return pl.BlockSpec(shape, lambda i: tuple(0 for _ in shape))


def intelligence_net_forward(x, params, *, tile_b=None, max_tile_b=8192):
    """x: (B, 1) float32, params: PyTorch-layout dict.  Returns (B, 1) float32.

    tile_b = batch samples (lanes) per grid step.  If None it is chosen adaptively:
    as large as possible (up to max_tile_b) while still giving >= 2 grid steps so the
    'parallel' batch axis can split across both v7x TensorCores.  Intermediates are
    chunked inside the kernel, so VMEM stays tiny even at multi-thousand-lane tiles
    (fits comfortably in v7x's 64 MiB as well as v5e/v6e's 128 MiB).
    """
    B = x.shape[0]
    assert x.ndim == 2 and x.shape[1] == 1
    x = x.astype(jnp.float32)

    if tile_b is None:
        half = max(_round_up(B, 128) // 2, 128)
        tile_b = min(max_tile_b, _round_up(half, 128))
    tile_b = _round_up(tile_b, CHUNK) if tile_b > CHUNK else _round_up(tile_b, 128)

    num_tiles = -(-B // tile_b)
    Bp = num_tiles * tile_b

    w1p, b1p, w2p, b2p, w3p, b3p, w4p, b4p = prepare_params(params)

    # Batch on the lane axis.  (B,1) and (1,B) share the same flat layout, so when no
    # padding is needed the reshape is free (no extra HBM read/write pass).
    if Bp == B:
        xt = x.reshape(1, B)
    else:
        xt = jnp.zeros((1, Bp), jnp.float32).at[0, :B].set(x[:, 0])

    x_spec = pl.BlockSpec((1, tile_b), lambda i: (0, i))
    o_spec = pl.BlockSpec((1, tile_b), lambda i: (0, i))
    in_specs = [
        x_spec,
        _const_spec(w1p.shape), _const_spec(b1p.shape),
        _const_spec(w2p.shape), _const_spec(b2p.shape),
        _const_spec(w3p.shape), _const_spec(b3p.shape),
        _const_spec(w4p.shape), _const_spec(b4p.shape),
    ]

    out_t = pl.pallas_call(
        mlp_kernel,
        out_shape=jax.ShapeDtypeStruct((1, Bp), jnp.float32),
        grid=(num_tiles,),
        in_specs=in_specs,
        out_specs=o_spec,
        compiler_params=pltpu.CompilerParams(
            dimension_semantics=("parallel",),      # megacore sharding on v7x
            vmem_limit_bytes=32 * 1024 * 1024,      # plenty: usage is << 1 MiB/step
        ),
    )(xt, w1p, b1p, w2p, b2p, w3p, b3p, w4p, b4p)

    if Bp == B:
        return out_t.reshape(B, 1)
    return out_t[0, :B].reshape(B, 1)


def reference_forward(x, params):
    """Pure-f32 reference identical to the PyTorch module."""
    h = x
    for name in ["fc1", "fc2", "fc3"]:
        w, b = params[name]
        h = jnp.maximum(h @ w.T + b, 0.0)
    w, b = params["fc4"]
    return h @ w.T + b


def reference_forward_bf16(x, params):
    """Reference that mirrors the kernel's numerics: bf16 fc2/fc3 matmuls with f32
    accumulation, bf16 fc2 epilogue (bias + ReLU), f32 fc3 epilogue and fc4."""
    w1, b1 = params["fc1"]
    w2, b2 = params["fc2"]
    w3, b3 = params["fc3"]
    w4, b4 = params["fc4"]
    h1 = jnp.maximum(x @ w1.T + b1, 0.0).astype(jnp.bfloat16)
    h2 = jnp.dot(h1, w2.T.astype(jnp.bfloat16), preferred_element_type=jnp.float32)
    h2 = jnp.maximum(h2.astype(jnp.bfloat16) + b2.astype(jnp.bfloat16), 0.0)
    h3 = jnp.dot(h2, w3.T.astype(jnp.bfloat16), preferred_element_type=jnp.float32)
    h3 = jnp.maximum(h3 + b3, 0.0)
    return h3 @ w4.T + b4


if __name__ == "__main__":
    key = jax.random.PRNGKey(0)
    kx, kx2, kp = jax.random.split(key, 3)
    params = init_params(kp)

    # Aligned-batch path (2 grid steps, no host-side padding).
    B = 1024
    x = jax.random.normal(kx, (B, 1), jnp.float32)
    out = jax.block_until_ready(intelligence_net_forward(x, params))
    assert out.shape == (B, 1)
    assert jnp.allclose(out, reference_forward_bf16(x, params), atol=5e-3, rtol=5e-3), \
        "mismatch vs bf16-matched reference"
    assert jnp.allclose(out, reference_forward(x, params), atol=5e-2, rtol=5e-2), \
        "mismatch vs f32 reference"

    # Ragged-batch path (padding + tail slice).
    B2 = 300
    x2 = jax.random.normal(kx2, (B2, 1), jnp.float32)
    out2 = jax.block_until_ready(intelligence_net_forward(x2, params))
    assert out2.shape == (B2, 1)
    assert jnp.allclose(out2, reference_forward_bf16(x2, params), atol=5e-3, rtol=5e-3), \
        "mismatch vs bf16-matched reference (ragged batch)"

    print("KERNEL_OK")
</pallas_src>

<mosaic_0001>
module attributes {stable_mosaic.version = 11 : i64} {
  func.func @mlp_kernel(%arg0: i32, %arg1: memref<1x512xf32, #tpu.memory_space<vmem>>, %arg2: memref<64x1xf32, #tpu.memory_space<vmem>>, %arg3: memref<64x1xf32, #tpu.memory_space<vmem>>, %arg4: memref<128x64xbf16, #tpu.memory_space<vmem>>, %arg5: memref<128x1xbf16, #tpu.memory_space<vmem>>, %arg6: memref<64x128xbf16, #tpu.memory_space<vmem>>, %arg7: memref<64x1xf32, #tpu.memory_space<vmem>>, %arg8: memref<64x1xf32, #tpu.memory_space<vmem>>, %arg9: memref<1x1xf32, #tpu.memory_space<vmem>>, %arg10: memref<1x512xf32, #tpu.memory_space<vmem>>) attributes {dimension_semantics = [#tpu.dimension_semantics<parallel>], iteration_bounds = array<i64: 2>, scalar_prefetch = 0 : i64, scratch_operands = 0 : i64, tpu.core_type = #tpu.core_type<tc>, window_params = [{transform_indices = @transform_0, window_bounds = array<i64: 1, 512>}, {pipeline_mode = #tpu.pipeline_mode<synchronous>, transform_indices = @transform_1, window_bounds = array<i64: 64, 1>}, {pipeline_mode = #tpu.pipeline_mode<synchronous>, transform_indices = @transform_2, window_bounds = array<i64: 64, 1>}, {pipeline_mode = #tpu.pipeline_mode<synchronous>, transform_indices = @transform_3, window_bounds = array<i64: 128, 64>}, {pipeline_mode = #tpu.pipeline_mode<synchronous>, transform_indices = @transform_4, window_bounds = array<i64: 128, 1>}, {pipeline_mode = #tpu.pipeline_mode<synchronous>, transform_indices = @transform_5, window_bounds = array<i64: 64, 128>}, {pipeline_mode = #tpu.pipeline_mode<synchronous>, transform_indices = @transform_6, window_bounds = array<i64: 64, 1>}, {pipeline_mode = #tpu.pipeline_mode<synchronous>, transform_indices = @transform_7, window_bounds = array<i64: 64, 1>}, {pipeline_mode = #tpu.pipeline_mode<synchronous>, transform_indices = @transform_8, window_bounds = array<i64: 1, 1>}, {transform_indices = @transform_9, window_bounds = array<i64: 1, 512>}]} {
    %c0 = arith.constant 0 : index
    %c0_0 = arith.constant 0 : index
    %0 = vector.load %arg1[%c0, %c0_0] : memref<1x512xf32, #tpu.memory_space<vmem>>, vector<1x512xf32>
    %c0_1 = arith.constant 0 : index
    %c0_2 = arith.constant 0 : index
    %1 = vector.load %arg2[%c0_1, %c0_2] : memref<64x1xf32, #tpu.memory_space<vmem>>, vector<64x1xf32>
    %2 = vector.broadcast %1 : vector<64x1xf32> to vector<64x512xf32>
    %3 = vector.broadcast %0 : vector<1x512xf32> to vector<64x512xf32>
    %4 = arith.mulf %2, %3 : vector<64x512xf32>
    %c0_3 = arith.constant 0 : index
    %c0_4 = arith.constant 0 : index
    %5 = vector.load %arg3[%c0_3, %c0_4] : memref<64x1xf32, #tpu.memory_space<vmem>>, vector<64x1xf32>
    %6 = vector.broadcast %5 : vector<64x1xf32> to vector<64x512xf32>
    %7 = arith.addf %4, %6 : vector<64x512xf32>
    %cst = arith.constant 0.000000e+00 : f32
    %8 = vector.broadcast %cst : f32 to vector<64x512xf32>
    %9 = arith.maximumf %7, %8 : vector<64x512xf32>
    %10 = arith.truncf %9 : vector<64x512xf32> to vector<64x512xbf16>
    %c0_5 = arith.constant 0 : index
    %c0_6 = arith.constant 0 : index
    %11 = vector.load %arg4[%c0_5, %c0_6] : memref<128x64xbf16, #tpu.memory_space<vmem>>, vector<128x64xbf16>
    %cst_7 = arith.constant dense<0.000000e+00> : vector<128x512xf32>
    %12 = tpu.matmul %11, %10, %cst_7 {dimension_numbers = #tpu.dot_dimension_numbers<[1], [0], [0], [1], [0, 0, 1, 1], [], []>} : vector<128x64xbf16>, vector<64x512xbf16>, vector<128x512xf32> -> vector<128x512xf32>
    %13 = arith.truncf %12 : vector<128x512xf32> to vector<128x512xbf16>
    %c0_8 = arith.constant 0 : index
    %c0_9 = arith.constant 0 : index
    %14 = vector.load %arg5[%c0_8, %c0_9] : memref<128x1xbf16, #tpu.memory_space<vmem>>, vector<128x1xbf16>
    %15 = vector.broadcast %14 : vector<128x1xbf16> to vector<128x512xbf16>
    %16 = arith.addf %13, %15 : vector<128x512xbf16>
    %cst_10 = arith.constant 0.000000e+00 : bf16
    %17 = vector.broadcast %cst_10 : bf16 to vector<128x512xbf16>
    %18 = arith.maximumf %16, %17 : vector<128x512xbf16>
    %c0_11 = arith.constant 0 : index
    %c0_12 = arith.constant 0 : index
    %19 = vector.load %arg6[%c0_11, %c0_12] : memref<64x128xbf16, #tpu.memory_space<vmem>>, vector<64x128xbf16>
    %cst_13 = arith.constant dense<0.000000e+00> : vector<64x512xf32>
    %20 = tpu.matmul %19, %18, %cst_13 {dimension_numbers = #tpu.dot_dimension_numbers<[1], [0], [0], [1], [0, 0, 1, 1], [], []>} : vector<64x128xbf16>, vector<128x512xbf16>, vector<64x512xf32> -> vector<64x512xf32>
    %c0_14 = arith.constant 0 : index
    %c0_15 = arith.constant 0 : index
    %21 = vector.load %arg7[%c0_14, %c0_15] : memref<64x1xf32, #tpu.memory_space<vmem>>, vector<64x1xf32>
    %22 = vector.broadcast %21 : vector<64x1xf32> to vector<64x512xf32>
    %23 = arith.addf %20, %22 : vector<64x512xf32>
    %cst_16 = arith.constant 0.000000e+00 : f32
    %24 = vector.broadcast %cst_16 : f32 to vector<64x512xf32>
    %25 = arith.maximumf %23, %24 : vector<64x512xf32>
    %c0_17 = arith.constant 0 : index
    %c0_18 = arith.constant 0 : index
    %26 = vector.load %arg8[%c0_17, %c0_18] : memref<64x1xf32, #tpu.memory_space<vmem>>, vector<64x1xf32>
    %27 = vector.broadcast %26 : vector<64x1xf32> to vector<64x512xf32>
    %28 = arith.mulf %27, %25 : vector<64x512xf32>
    %cst_19 = arith.constant dense<0.000000e+00> : vector<512xf32>
    %29 = vector.multi_reduction <add>, %28, %cst_19 [0] : vector<64x512xf32> to vector<512xf32>
    %30 = vector.shape_cast %29 : vector<512xf32> to vector<1x512xf32>
    %c0_20 = arith.constant 0 : index
    %c0_21 = arith.constant 0 : index
    %31 = vector.load %arg9[%c0_20, %c0_21] : memref<1x1xf32, #tpu.memory_space<vmem>>, vector<1x1xf32>
    %32 = vector.broadcast %31 : vector<1x1xf32> to vector<1x512xf32>
    %33 = arith.addf %30, %32 : vector<1x512xf32>
    %c0_22 = arith.constant 0 : index
    %c0_23 = arith.constant 0 : index
    %34 = vector.load %arg10[%c0_22, %c0_23] : memref<1x512xf32, #tpu.memory_space<vmem>>, vector<1x512xf32>
    tpu.vector_store %arg10[%c0_22, %c0_23], %33 {strides = array<i32>} : memref<1x512xf32, #tpu.memory_space<vmem>>, vector<1x512xf32>,
    return
  }
  func.func @transform_0(%arg0: i32) -> (i32, i32) {
    %c0_i32 = arith.constant 0 : i32
    %c0_i32_0 = arith.constant 0 : i32
    return %c0_i32, %arg0 : i32, i32
  }
  func.func @transform_1(%arg0: i32) -> (i32, i32) {
    %c0_i32 = arith.constant 0 : i32
    %c0_i32_0 = arith.constant 0 : i32
    %c0_i32_1 = arith.constant 0 : i32
    return %c0_i32, %c0_i32_0 : i32, i32
  }
  func.func @transform_2(%arg0: i32) -> (i32, i32) {
    %c0_i32 = arith.constant 0 : i32
    %c0_i32_0 = arith.constant 0 : i32
    %c0_i32_1 = arith.constant 0 : i32
    return %c0_i32, %c0_i32_0 : i32, i32
  }
  func.func @transform_3(%arg0: i32) -> (i32, i32) {
    %c0_i32 = arith.constant 0 : i32
    %c0_i32_0 = arith.constant 0 : i32
    %c0_i32_1 = arith.constant 0 : i32
    return %c0_i32, %c0_i32_0 : i32, i32
  }
  func.func @transform_4(%arg0: i32) -> (i32, i32) {
    %c0_i32 = arith.constant 0 : i32
    %c0_i32_0 = arith.constant 0 : i32
    %c0_i32_1 = arith.constant 0 : i32
    return %c0_i32, %c0_i32_0 : i32, i32
  }
  func.func @transform_5(%arg0: i32) -> (i32, i32) {
    %c0_i32 = arith.constant 0 : i32
    %c0_i32_0 = arith.constant 0 : i32
    %c0_i32_1 = arith.constant 0 : i32
    return %c0_i32, %c0_i32_0 : i32, i32
  }
  func.func @transform_6(%arg0: i32) -> (i32, i32) {
    %c0_i32 = arith.constant 0 : i32
    %c0_i32_0 = arith.constant 0 : i32
    %c0_i32_1 = arith.constant 0 : i32
    return %c0_i32, %c0_i32_0 : i32, i32
  }
  func.func @transform_7(%arg0: i32) -> (i32, i32) {
    %c0_i32 = arith.constant 0 : i32
    %c0_i32_0 = arith.constant 0 : i32
    %c0_i32_1 = arith.constant 0 : i32
    return %c0_i32, %c0_i32_0 : i32, i32
  }
  func.func @transform_8(%arg0: i32) -> (i32, i32) {
    %c0_i32 = arith.constant 0 : i32
    %c0_i32_0 = arith.constant 0 : i32
    %c0_i32_1 = arith.constant 0 : i32
    return %c0_i32, %c0_i32_0 : i32, i32
  }
  func.func @transform_9(%arg0: i32) -> (i32, i32) {
    %c0_i32 = arith.constant 0 : i32
    %c0_i32_0 = arith.constant 0 : i32
    return %c0_i32, %arg0 : i32, i32
  }
}

</mosaic_0001>

<bundles_post_ra>
// kernel: tpu_custom_call.1
= control target key start
LH: loop header
LB: loop body
LE: loop exit
PB: predicated region body
PF: predicated region fallthrough
CT: control target
= control target key end

     0   :  { %s2406_s0 = inlined_call_operand.vmem [shape: f32[1,1024], index: 0, kind: input, shape index: {}]   ;;  %s2407_s1 = inlined_call_operand.vmem [shape: f32[64,1], index: 1, kind: input, shape index: {}]   ;;  %s2408_s2 = inlined_call_operand.vmem [shape: f32[64,1], index: 2, kind: input, shape index: {}]   ;;  %s2409_s3 = inlined_call_operand.vmem [shape: bf16[128,64], index: 3, kind: input, shape index: {}]   ;;  %s2410_s4 = inlined_call_operand.vmem [shape: bf16[128,1], index: 4, kind: input, shape index: {}]   ;;  %s2411_s5 = inlined_call_operand.vmem [shape: bf16[64,128], index: 5, kind: input, shape index: {}]   ;;  %s2412_s6 = inlined_call_operand.vmem [shape: f32[64,1], index: 6, kind: input, shape index: {}]   ;;  %s2413_s7 = inlined_call_operand.vmem [shape: f32[64,1], index: 7, kind: input, shape index: {}]   ;;  %s2414_s8 = inlined_call_operand.<no memory space> [shape: f32[1,1], index: 8, kind: input, shape index: {}]   ;;  %s2415_s9 = inlined_call_operand.hbm [shape: f32[1,1024], index: 9, kind: output, shape index: {}]  }
   0x1   :  { %v14_v0 = vstv %s2414_s8 }
   0x2   :  { %15 = vst [vmem:[#allocation2] sm:$0x1] %v14_v0 }
   0x3   :  { %16 = vsyncpa [#allocation4], 0 }
   0x4   :  { %18 = vsyncpa [#allocation4 + $0x1], 0  ;;  %s1957_s11 = smov 0   ;;  %s1959_s12 = smov 0  }
   0x5   :  { %s1961_s13 = smov 0   ;;  %s1963_s14 = smov 0  }
   0x6 LB: > { %s1978_s8 = sadd.s32 4294967295, %s1898_s14   ;;  %s1732_s15 = sadd.s32 4294967294, %s1898_s14   ;;  %s1898_s14 = sphi %s1963_s14, %s2421_s14   ;;  %s1894_s13 = sphi %s1961_s13, %s2420_s13   ;;  %s1890_s12 = sphi %s1959_s12, %s2419_s12   ;;  %s1886_s11 = sphi %s1957_s11, %s2418_s11  }
   0x7   : > { %s1982_s16 = sadd.s32 1, %s1898_s14   ;;  %s225_s17 = sadd.s32 1, %s1894_s13 }
   0x8   : > { %s222_s18 = ssub.s32 %s1898_s14, %s1982_s16  ;;  %p235_p0 = scmp.ne.s32.totalorder %s1894_s13, %s1890_s12 }
   0x9   : > { %p223_p1 = scmp.eq.s32.totalorder %s222_s18, 0  ;;  %p236_p2 = scmp.eq.s32.totalorder %s1978_s8, 1 }
   0xa   : > { %p241_p3 = scmp.ne.s32.totalorder %s1890_s12, %s1886_s11  ;;  %p242_p4 = scmp.eq.s32.totalorder %s1732_s15, 1 }
   0xb   : > { %s1993_s19 = scalar_select %p223_p1, %s1894_s13, %s225_s17  }
   0xc   : > { %p1995_p5 = por %p236_p2, %p235_p0  ;;  %p1999_p6 = por %p242_p4, %p241_p3 }
   0xd   : > { %p1735_p7 = scmp.ge.s32.totalorder %s1898_s14, 1  ;;  %p292_p8 = scmp.lt.s32.totalorder %s1898_s14, 3 }
   0xf   : > { %p293_p9 = pnand %p1735_p7, %p292_p8 }
  0x10   : > { %v436_v1 = vld [vmem:[%s2408_s2] sm:$0xff] (!%p293_p9)  ;;  %v1900_v3 = vmov (!%p293_p9), 0   ;;  %v437_v4 = vld [vmem:[%s2408_s2 + $0x8] sm:$0xff] (!%p293_p9)  ;;  %v338_v6 = vld [vmem:[%s2407_s1 + $0x18] sm:$0xff] (!%p293_p9)  ;;  %s1737_s27 = sshll.u32 (!%p293_p9), %s1978_s8, 2  ;;  %v384_v51 = vlaneseq (!%p293_p9)  ;;  %vm620_vm0 = vcmask (!%p293_p9), 523264  }
  0x11   : > { %296 = sbr.rel (%p293_p9) target bundleno = 749 (0x2ed), region = 56  ;;  %v335_v2 = vld [vmem:[%s2407_s1] sm:$0xff] (!%p293_p9)  ;;  %1823 = vset.pattern.permute.xlu1 (!%p293_p9), %v1900_v3  ;;  %1822 = vset.pattern.permute.xlu0 (!%p293_p9), %v1900_v3  ;;  %v336_v5 = vld [vmem:[%s2407_s1 + $0x8] sm:$0xff] (!%p293_p9)  ;;  %v337_v7 = vld [vmem:[%s2407_s1 + $0x10] sm:$0xff] (!%p293_p9)  ;;  %p328_p10 = scmp.lt.s32.totalorder (!%p293_p9), %s1737_s27, 7 }
  0x12   : > { %446 = vperm.xlu1 (!%p293_p9), %1823, %v436_v1   ;;  %345 = vperm.xlu0 (!%p293_p9), %1822, %v335_v2   ;;  %v439_v8 = vld [vmem:[%s2408_s2 + $0x18] sm:$0xff] (!%p293_p9)  ;;  %v438_v9 = vld [vmem:[%s2408_s2 + $0x10] sm:$0xff] (!%p293_p9)  ;;  %v340_v10 = vld [vmem:[%s2407_s1 + $0x28] sm:$0xff] (!%p293_p9)  ;;  %v2155_v52 = vshrl.u32 (!%p293_p9), %v384_v51, 7  ;;  %s324_s29 = sand.u32 (!%p293_p9), 1, %s1890_s12   ;;  %s1779_s10 = sshll.u32 (!%p293_p9), %s1978_s8, 6 }
  0x13   : > { %677 = vmatprep.mubr.bf16.mxu0 (!%p293_p9), %v1900_v3  ;;  %790 = vmatprep.mubr.bf16.mxu1 (!%p293_p9), %v1900_v3  ;;  %v339_v11 = vld [vmem:[%s2407_s1 + $0x20] sm:$0xff] (!%p293_p9)  ;;  %v441_v12 = vld [vmem:[%s2408_s2 + $0x28] sm:$0xff] (!%p293_p9)  ;;  %v342_v14 = vld [vmem:[%s2407_s1 + $0x38] sm:$0xff] (!%p293_p9)  ;;  %vm1658_vm1 = vcmp.lt.s32.totalorder (!%p293_p9), %v384_v51, 512  ;;  %s2364_s23 = scalar_lea.hbm (!%p293_p9), %s2415_s9, %s1779_s10  ;;  %s1662_s24 = scalar_lea.sflag (!%p293_p9), [#allocation4], %s324_s29 }
  0x14   : > { %v440_v13 = vld [vmem:[%s2408_s2 + $0x20] sm:$0xff] (!%p293_p9)  ;;  %v341_v15 = vld [vmem:[%s2407_s1 + $0x30] sm:$0xff] (!%p293_p9)  ;;  %v443_v16 = vld [vmem:[%s2408_s2 + $0x38] sm:$0xff] (!%p293_p9)  ;;  %v386_v53 = vsub.s32 (!%p293_p9), 0, %v2155_v52  ;;  %v394_v54 = vsub.s32 (!%p293_p9), 2, %v2155_v52  ;;  %v390_v55 = vsub.s32 (!%p293_p9), 1, %v2155_v52 }
  0x15   : > { %v442_v17 = vld [vmem:[%s2408_s2 + $0x30] sm:$0xff] (!%p293_p9)  ;;  %v904_v18 = vld [vmem:[%s2410_s4 + $0x4] sm:$0xf] (!%p293_p9)  ;;  %v903_v19 = vld [vmem:[%s2410_s4] sm:$0xf] (!%p293_p9)  ;;  %v398_v56 = vsub.s32 (!%p293_p9), 3, %v2155_v52 }
  0x16   : > { %451 = vperm.xlu1 (!%p293_p9), %1823, %v437_v4   ;;  %350 = vperm.xlu0 (!%p293_p9), %1822, %v336_v5   ;;  %v906_v20 = vld [vmem:[%s2410_s4 + $0xc] sm:$0xf] (!%p293_p9)  ;;  %v905_v21 = vld [vmem:[%s2410_s4 + $0x8] sm:$0xf] (!%p293_p9)  ;;  %v908_v22 = vld [vmem:[%s2410_s4 + $0x14] sm:$0xf] (!%p293_p9) }
  0x17   : > { %v907_v23 = vld [vmem:[%s2410_s4 + $0x10] sm:$0xf] (!%p293_p9)  ;;  %v910_v24 = vld [vmem:[%s2410_s4 + $0x1c] sm:$0xf] (!%p293_p9)  ;;  %v909_v25 = vld [vmem:[%s2410_s4 + $0x18] sm:$0xf] (!%p293_p9) }
  0x18   : > { %v912_v26 = vld [vmem:[%s2410_s4 + $0x24] sm:$0xf]  ;;  %v911_v27 = vld [vmem:[%s2410_s4 + $0x20] sm:$0xf]  ;;  %v914_v28 = vld [vmem:[%s2410_s4 + $0x2c] sm:$0xf] }
  0x19   : > { %v913_v29 = vld [vmem:[%s2410_s4 + $0x28] sm:$0xf]  ;;  %v916_v30 = vld [vmem:[%s2410_s4 + $0x34] sm:$0xf]  ;;  %v915_v31 = vld [vmem:[%s2410_s4 + $0x30] sm:$0xf] }
  0x1a   : > { %360 = vperm.xlu1 %1823, %v338_v6   ;;  %355 = vperm.xlu0 %1822, %v337_v7   ;;  %v918_v32 = vld [vmem:[%s2410_s4 + $0x3c] sm:$0xf]  ;;  %v917_v33 = vld [vmem:[%s2410_s4 + $0x38] sm:$0xf]  ;;  %v1232_v34 = vld [vmem:[%s2412_s6 + $0x8] sm:$0xff]  ;;  %s2423_s27 = smov (!%p328_p10, %s1737_s27), 7 }
  0x1b   : > { %v1231_v35 = vld [vmem:[%s2412_s6] sm:$0xff]  ;;  %v1234_v36 = vld [vmem:[%s2412_s6 + $0x18] sm:$0xff]  ;;  %v1233_v37 = vld [vmem:[%s2412_s6 + $0x10] sm:$0xff]  ;;  %s330_s30 = scalar_lea.vmem %s2406_s0, %s2423_s27  ;;  %s1903_s8 = smov [#allocation3]  }
  0x1c   : > { %v1482_v38 = vld [vmem:[%s2413_s7 + $0x8] sm:$0xff]  ;;  %v1481_v39 = vld [vmem:[%s2413_s7] sm:$0xff]  ;;  %v1483_v40 = vld [vmem:[%s2413_s7 + $0x10] sm:$0xff]  ;;  %s1840_s26 = sshll.u32 %s1903_s8, 4  ;;  %s1841_s26 = int_to_ptr.vmem [resolvable:$false] %s1840_s26 }
  0x1d   : > { %v1235_v41 = vld [vmem:[%s2412_s6 + $0x20] sm:$0xff]  ;;  %v1484_v42 = vld [vmem:[%s2413_s7 + $0x18] sm:$0xff]  ;;  %v1236_v43 = vld [vmem:[%s2412_s6 + $0x28] sm:$0xff]  ;;  %s1842_s27 = scalar_lea.vmem %s1841_s26, 128 }
  0x1e   : > { %461 = vperm.xlu1 %1823, %v439_v8   ;;  %456 = vperm.xlu0 %1822, %v438_v9   ;;  %v1485_v44 = vld [vmem:[%s2413_s7 + $0x20] sm:$0xff]  ;;  %v1237_v45 = vld [vmem:[%s2412_s6 + $0x30] sm:$0xff]  ;;  %v1486_v46 = vld [vmem:[%s2413_s7 + $0x28] sm:$0xff] }
  0x1f   : > { %v1238_v47 = vld [vmem:[%s2412_s6 + $0x38] sm:$0xff]  ;;  %v1487_v49 = vld [vmem:[%s2413_s7 + $0x30] sm:$0xff]  ;;  %v1613_v50 = vld [vmem:[#allocation2] sm:$0x1] }
  0x20   : > { %v1488_v48 = vld [vmem:[%s2413_s7 + $0x38] sm:$0xff]  ;;  %v334_v57 = vld [vmem:[%s330_s30] sm:$0xf]  ;;  %s1736_s30 = sshll.u32 %s324_s29, 2 }
  0x21   : > { %v2166_v58 = vrot.slane %v334_v57, %v386_v53  ;;  %v2168_v59 = vrot.slane %v334_v57, %v394_v54  ;;  %v2170_v60 = vrot.slane %v334_v57, %v390_v55  ;;  %v2172_v61 = vrot.slane %v334_v57, %v398_v56  ;;  %s326_s15 = scalar_lea.vmem [#allocation3], %s1736_s30 }
  0x22   : > { %370 = vperm.xlu1 %1823, %v340_v10   ;;  %365 = vperm.xlu0 %1822, %v339_v11   ;;  %s1676_s17 = sshll.u32 %s326_s15, 4  ;;  %s2366_s17 = int_to_ptr.vmem [resolvable:$true] %s1676_s17 }
  0x23   : > { %s1836_s25 = scalar_lea.vmem %s2366_s17, 64  ;;  %p1843_p0 = scmp.lt.s32.totalorder %s2366_s17, %s1841_s26 }
  0x24   : > { %p1837_p11 = scmp.ne.s32.totalorder %s2366_s17, %s1836_s25  ;;  %p1844_p1 = scmp.lt.s32.totalorder %s1842_s27, %s1836_s25 }
  0x26   : > { %471 = vperm.xlu1 %1823, %v441_v12   ;;  %466 = vperm.xlu0 %1822, %v440_v13   ;;  %p1838_p12 = pnand %p1837_p11, %p1995_p5  ;;  %p1845_p2 = por %p1844_p1, %p1843_p0 }
  0x28   : > { %p1839_p13 = pneg %p1838_p12 }
  0x2a   : > { %380 = vperm.xlu1 %1823, %v342_v14   ;;  %375 = vperm.xlu0 %1822, %v341_v15   ;;  %p1846_p3 = pnand %p1845_p2, %p1839_p13 }
  0x2e   : > { %481 = vperm.xlu1 %1823, %v443_v16   ;;  %476 = vperm.xlu0 %1822, %v442_v17  }
  0x32   : > { %933 = vperm.xlu1 %1823, %v904_v18   ;;  %921 = vperm.xlu0 %1822, %v903_v19  }
  0x36   : > { %957 = vperm.xlu1 %1823, %v906_v20   ;;  %945 = vperm.xlu0 %1822, %v905_v21  }
  0x3a   : > { %981 = vperm.xlu1 %1823, %v908_v22   ;;  %969 = vperm.xlu0 %1822, %v907_v23  }
  0x3e   : > { %1005 = vperm.xlu1 %1823, %v910_v24   ;;  %993 = vperm.xlu0 %1822, %v909_v25  }
  0x42   : > { %1029 = vperm.xlu1 %1823, %v912_v26   ;;  %1017 = vperm.xlu0 %1822, %v911_v27  }
  0x46   : > { %1053 = vperm.xlu1 %1823, %v914_v28   ;;  %1041 = vperm.xlu0 %1822, %v913_v29  }
  0x4a   : > { %1077 = vperm.xlu1 %1823, %v916_v30   ;;  %1065 = vperm.xlu0 %1822, %v915_v31  }
  0x4e   : > { %1101 = vperm.xlu1 %1823, %v918_v32   ;;  %1089 = vperm.xlu0 %1822, %v917_v33  }
  0x52   : > { %1246 = vperm.xlu1 %1823, %v1232_v34   ;;  %1241 = vperm.xlu0 %1822, %v1231_v35  }
  0x56   : > { %1256 = vperm.xlu1 %1823, %v1234_v36   ;;  %1251 = vperm.xlu0 %1822, %v1233_v37  }
  0x5a   : > { %1496 = vperm.xlu1 %1823, %v1482_v38   ;;  %1491 = vperm.xlu0 %1822, %v1481_v39  }
  0x5e   : > { %1501 = vperm.xlu1 %1823, %v1483_v40   ;;  %1261 = vperm.xlu0 %1822, %v1235_v41  }
  0x62   : > { %1506 = vperm.xlu1 %1823, %v1484_v42   ;;  %1266 = vperm.xlu0 %1822, %v1236_v43  }
  0x66   : > { %1511 = vperm.xlu1 %1823, %v1485_v44   ;;  %1271 = vperm.xlu0 %1822, %v1237_v45  }
  0x6a   : > { %1516 = vperm.xlu1 %1823, %v1486_v46   ;;  %1276 = vperm.xlu0 %1822, %v1238_v47  }
  0x6e   : > { %1526 = vperm.xlu1 %1823, %v1488_v48   ;;  %1521 = vperm.xlu0 %1822, %v1487_v49  }
  0x72   : > { %1616 = vperm.xlu0 %1822, %v1613_v50  }
  0x91   : > { %v447_v62 = vpop.permute.xlu1 %446  ;;  %v346_v63 = vpop.permute.xlu0 %345 }
  0x92   : > { %v404_v0 = vmul.f32 %v2166_v58, %v346_v63  ;;  %v406_v1 = vmul.f32 %v2168_v59, %v346_v63  ;;  %v405_v2 = vmul.f32 %v2170_v60, %v346_v63  ;;  %v407_v4 = vmul.f32 %v2172_v61, %v346_v63 }
  0x94   : > { %v485_v7 = vadd.f32 %v447_v62, %v405_v2  ;;  %v487_v8 = vadd.f32 %v447_v62, %v407_v4  ;;  %v484_v9 = vadd.f32 %v447_v62, %v404_v0  ;;  %v486_v13 = vadd.f32 %v447_v62, %v406_v1 }
  0x95   : > { %v452_v5 = vpop.permute.xlu1 %451  ;;  %v351_v6 = vpop.permute.xlu0 %350 }
  0x96   : > { %v408_v10 = vmul.f32 %v2166_v58, %v351_v6  ;;  %v410_v11 = vmul.f32 %v2168_v59, %v351_v6  ;;  %v409_v12 = vmul.f32 %v2170_v60, %v351_v6  ;;  %v411_v14 = vmul.f32 %v2172_v61, %v351_v6 }
  0x97   : > { %v517_v21 = vmax.f32 %v485_v7, 0.0  ;;  %v519_v22 = vmax.f32 %v487_v8, 0.0  ;;  %v516_v23 = vmax.f32 %v484_v9, 0.0  ;;  %v518_v24 = vmax.f32 %v486_v13, 0.0 }
  0x98   : > { %v489_v15 = vadd.f32 %v452_v5, %v409_v12  ;;  %v488_v16 = vadd.f32 %v452_v5, %v408_v10  ;;  %v490_v17 = vadd.f32 %v452_v5, %v410_v11  ;;  %v491_v20 = vadd.f32 %v452_v5, %v411_v14 }
  0x99   : > { %v361_v18 = vpop.permute.xlu1 %360  ;;  %v356_v19 = vpop.permute.xlu0 %355 }
  0x9a   : > { %v416_v25 = vmul.f32 %v2166_v58, %v361_v18  ;;  %v417_v26 = vmul.f32 %v2170_v60, %v361_v18  ;;  %v418_v27 = vmul.f32 %v2168_v59, %v361_v18  ;;  %v419_v28 = vmul.f32 %v2172_v61, %v361_v18 }
  0x9b   : > { %v521_v29 = vmax.f32 %v489_v15, 0.0  ;;  %v523_v30 = vmax.f32 %v491_v20, 0.0  ;;  %v520_v31 = vmax.f32 %v488_v16, 0.0  ;;  %v522_v32 = vmax.f32 %v490_v17, 0.0 }
  0x9c   : > { %v412_v33 = vmul.f32 %v2166_v58, %v356_v19  ;;  %v413_v34 = vmul.f32 %v2170_v60, %v356_v19  ;;  %v414_v35 = vmul.f32 %v2168_v59, %v356_v19  ;;  %v415_v36 = vmul.f32 %v2172_v61, %v356_v19 }
  0x9d   : > { %v462_v37 = vpop.permute.xlu1 %461  ;;  %v457_v38 = vpop.permute.xlu0 %456  ;;  %v549_v47 = vpack.c.bf16 %v521_v29, %v517_v21  ;;  %v551_v48 = vpack.c.bf16 %v523_v30, %v519_v22  ;;  %v548_v49 = vpack.c.bf16 %v520_v31, %v516_v23  ;;  %v550_v50 = vpack.c.bf16 %v522_v32, %v518_v24 }
  0x9e   : > { %v496_v39 = vadd.f32 %v462_v37, %v416_v25  ;;  %v497_v40 = vadd.f32 %v462_v37, %v417_v26  ;;  %v498_v41 = vadd.f32 %v462_v37, %v418_v27  ;;  %v499_v42 = vadd.f32 %v462_v37, %v419_v28 }
  0x9f   : > { %v492_v43 = vadd.f32 %v457_v38, %v412_v33  ;;  %v493_v44 = vadd.f32 %v457_v38, %v413_v34  ;;  %v494_v45 = vadd.f32 %v457_v38, %v414_v35  ;;  %v495_v46 = vadd.f32 %v457_v38, %v415_v36  ;;  %645 = vmatprep.subr.bf16.mxu0 %v549_v47 }
  0xa0   : > { %v529_v57 = vmax.f32 %v497_v40, 0.0  ;;  %v531_v63 = vmax.f32 %v499_v42, 0.0  ;;  %758 = vmatprep.subr.bf16.mxu1 %v551_v48  ;;  %646 = vmatpush1.bf16.msra.mxu0 %v548_v49  ;;  %v528_v7 = vmax.f32 %v496_v39, 0.0  ;;  %v530_v17 = vmax.f32 %v498_v41, 0.0 }
  0xa1   : > { %v371_v54 = vpop.permute.xlu1 %370  ;;  %v366_v55 = vpop.permute.xlu0 %365  ;;  %v525_v56 = vmax.f32 %v493_v44, 0.0  ;;  %v527_v62 = vmax.f32 %v495_v46, 0.0  ;;  %v524_v2 = vmax.f32 %v492_v43, 0.0  ;;  %759 = vmatpush1.bf16.msra.mxu1 %v550_v50  ;;  %v526_v16 = vmax.f32 %v494_v45, 0.0 }
  0xa2   : > { %v424_v0 = vmul.f32 %v2166_v58, %v371_v54  ;;  %v425_v1 = vmul.f32 %v2170_v60, %v371_v54  ;;  %v426_v4 = vmul.f32 %v2168_v59, %v371_v54  ;;  %v427_v5 = vmul.f32 %v2172_v61, %v371_v54 }
  0xa3   : > { %v420_v6 = vmul.f32 %v2166_v58, %v366_v55  ;;  %v421_v8 = vmul.f32 %v2170_v60, %v366_v55  ;;  %v422_v9 = vmul.f32 %v2168_v59, %v366_v55  ;;  %v553_v10 = vpack.c.bf16 %v529_v57, %v525_v56 }
  0xa4   : > { %v555_v11 = vpack.c.bf16 %v531_v63, %v527_v62  ;;  %v423_v12 = vmul.f32 %v2172_v61, %v366_v55  ;;  %v552_v15 = vpack.c.bf16 %v528_v7, %v524_v2  ;;  %v554_v26 = vpack.c.bf16 %v530_v17, %v526_v16  ;;  %v1829_v16 = vld [vmem:[%s2409_s3 + $0x28] sm:$0xff]   ;;  %v1830_v17 = vld [vmem:[%s2409_s3 + $0x30] sm:$0xff]  }
  0xa5   : > { %v472_v13 = vpop.permute.xlu1 %471  ;;  %v467_v14 = vpop.permute.xlu0 %466  ;;  %647 = vmatprep.subr.bf16.mxu0 %v553_v10 }
  0xa6   : > { %760 = vmatprep.subr.bf16.mxu1 %v555_v11  ;;  %v504_v18 = vadd.f32 %v472_v13, %v424_v0  ;;  %v505_v19 = vadd.f32 %v472_v13, %v425_v1  ;;  %v506_v20 = vadd.f32 %v472_v13, %v426_v4  ;;  %v507_v21 = vadd.f32 %v472_v13, %v427_v5  ;;  %v1824_v11 = vld [vmem:[%s2409_s3] sm:$0xff]   ;;  %v1826_v13 = vld [vmem:[%s2409_s3 + $0x10] sm:$0xff]  }
  0xa7   : > { %v500_v22 = vadd.f32 %v467_v14, %v420_v6  ;;  %v501_v23 = vadd.f32 %v467_v14, %v421_v8  ;;  %v502_v24 = vadd.f32 %v467_v14, %v422_v9  ;;  %648 = vmatpush1.bf16.msra.mxu0 %v552_v15  ;;  %v503_v25 = vadd.f32 %v467_v14, %v423_v12  ;;  %v1825_v12 = vld [vmem:[%s2409_s3 + $0x8] sm:$0xff]   ;;  %v1827_v14 = vld [vmem:[%s2409_s3 + $0x18] sm:$0xff]   ;;  %v1828_v15 = vld [vmem:[%s2409_s3 + $0x20] sm:$0xff]  }
  0xa8   : > { %v537_v27 = vmax.f32 %v505_v19, 0.0  ;;  %v536_v28 = vmax.f32 %v504_v18, 0.0  ;;  %761 = vmatpush1.bf16.msra.mxu1 %v554_v26  ;;  %v539_v33 = vmax.f32 %v507_v21, 0.0  ;;  %v538_v42 = vmax.f32 %v506_v20, 0.0  ;;  %v1831_v18 = vld [vmem:[%s2409_s3 + $0x38] sm:$0xff]  }
  0xa9   : > { %v381_v29 = vpop.permute.xlu1 %380  ;;  %v376_v30 = vpop.permute.xlu0 %375  ;;  %v533_v31 = vmax.f32 %v501_v23, 0.0  ;;  %v532_v32 = vmax.f32 %v500_v22, 0.0  ;;  %v534_v34 = vmax.f32 %v502_v24, 0.0  ;;  %v535_v40 = vmax.f32 %v503_v25, 0.0 }
  0xaa   : > { %v432_v35 = vmul.f32 %v2166_v58, %v381_v29  ;;  %v433_v36 = vmul.f32 %v2170_v60, %v381_v29  ;;  %v434_v37 = vmul.f32 %v2168_v59, %v381_v29  ;;  %v435_v38 = vmul.f32 %v2172_v61, %v381_v29 }
  0xab   : > { %v557_v39 = vpack.c.bf16 %v537_v27, %v533_v31  ;;  %v556_v41 = vpack.c.bf16 %v536_v28, %v532_v32  ;;  %v428_v43 = vmul.f32 %v2166_v58, %v376_v30  ;;  %v429_v44 = vmul.f32 %v2170_v60, %v376_v30 }
  0xac   : > { %v430_v45 = vmul.f32 %v2168_v59, %v376_v30  ;;  %v431_v46 = vmul.f32 %v2172_v61, %v376_v30  ;;  %v559_v49 = vpack.c.bf16 %v539_v33, %v535_v40  ;;  %v558_v0 = vpack.c.bf16 %v538_v42, %v534_v34 }
  0xad   : > { %v482_v47 = vpop.permute.xlu1 %481  ;;  %v477_v48 = vpop.permute.xlu0 %476  ;;  %649 = vmatprep.subr.bf16.mxu0 %v557_v39  ;;  %v1901_v19 = vmov 839922192  }
  0xae   : > { %v512_v50 = vadd.f32 %v482_v47, %v432_v35  ;;  %v513_v54 = vadd.f32 %v482_v47, %v433_v36  ;;  %v514_v55 = vadd.f32 %v482_v47, %v434_v37  ;;  %v515_v56 = vadd.f32 %v482_v47, %v435_v38  ;;  %650 = vmatpush1.bf16.msra.mxu0 %v556_v41 }
  0xaf   : > { %v508_v57 = vadd.f32 %v477_v48, %v428_v43  ;;  %v509_v62 = vadd.f32 %v477_v48, %v429_v44  ;;  %v510_v63 = vadd.f32 %v477_v48, %v430_v45  ;;  %762 = vmatprep.subr.bf16.mxu1 %v559_v49  ;;  %v511_v58 = vadd.f32 %v477_v48, %v431_v46 }
  0xb0   : > { %v545_v60 = vmax.f32 %v513_v54, 0.0  ;;  %v544_v1 = vmax.f32 %v512_v50, 0.0  ;;  %v547_v2 = vmax.f32 %v515_v56, 0.0  ;;  %763 = vmatpush1.bf16.msra.mxu1 %v558_v0  ;;  %v546_v6 = vmax.f32 %v514_v55, 0.0 }
  0xb1   : > { %v541_v59 = vmax.f32 %v509_v62, 0.0  ;;  %v540_v61 = vmax.f32 %v508_v57, 0.0  ;;  %v542_v4 = vmax.f32 %v510_v63, 0.0  ;;  %v543_v5 = vmax.f32 %v511_v58, 0.0  ;;  %v934_v22 = vpop.permute.xlu1 %933  ;;  %v922_v24 = vpop.permute.xlu0 %921 }
  0xb2   : > { %v925_v20 = vunpack.c.l.s4 %v1901_v19 }
  0xb3   : > { %v561_v7 = vpack.c.bf16 %v545_v60, %v541_v59  ;;  %v560_v8 = vpack.c.bf16 %v544_v1, %v540_v61  ;;  %v563_v9 = vpack.c.bf16 %v547_v2, %v543_v5  ;;  %v562_v10 = vpack.c.bf16 %v546_v6, %v542_v4 }
  0xb4   : > { %v926_v21 = vunpack.c.0.s8 %v925_v20 }
  0xb5   : > { %651 = vmatprep.subr.bf16.mxu0 %v561_v7  ;;  %764 = vmatprep.subr.bf16.mxu1 %v563_v9  ;;  %v958_v27 = vpop.permute.xlu1 %957  ;;  %v946_v37 = vpop.permute.xlu0 %945 }
  0xb6   : > { %652 = vmatpush1.bf16.msra.mxu0 %v560_v8  ;;  %765 = vmatpush1.bf16.msra.mxu1 %v562_v10  ;;  %v2263_v23 = vsub.s32 %v926_v21, %v2155_v52 }
  0xb8   : > { %v942_v25 = vrot.slane %v934_v22, %v2263_v23  ;;  %v930_v26 = vrot.slane %v922_v24, %v2263_v23  ;;  %v966_v45 = vrot.slane %v958_v27, %v2263_v23  ;;  %v954_v46 = vrot.slane %v946_v37, %v2263_v23 }
  0xb9   : > { %1746 = vmatmul.mubr.msk.bf16.vlgmr.msra.gmra.mrb[0].mxu0 %vm620_vm0, %v1824_v11  ;;  %1754 = vmatmul.mubr.msk.bf16.vlgmr.msra.gmra.mrb[0].mxu1 %vm620_vm0, %v1824_v11  ;;  %v982_v48 = vpop.permute.xlu1 %981  ;;  %v970_v2 = vpop.permute.xlu0 %969 }
  0xba   : > { %687 = vmatprep.mubr.bf16.mxu0 %v1900_v3  ;;  %800 = vmatprep.mubr.bf16.mxu1 %v1900_v3  ;;  %v1762_v33 = vcombine.low %v930_v26, %v942_v25  ;;  %v1763_v0 = vcombine.low %v954_v46, %v966_v45  ;;  %v990_v10 = vrot.slane %v982_v48, %v2263_v23 }
  0xbb   : > { %v978_v11 = vrot.slane %v970_v2, %v2263_v23 }
  0xbd   : > { %v1764_v24 = vcombine.low %v978_v11, %v990_v10 }
  0xc1   : > { %1747 = vmatmul.mubr.msk.bf16.gmra.mrb[4].mxu0 %vm620_vm0, %v1825_v12  ;;  %1755 = vmatmul.mubr.msk.bf16.gmra.mrb[4].mxu1 %vm620_vm0, %v1825_v12 }
  0xc2   : > { %697 = vmatprep.mubr.bf16.mxu0 %v1900_v3  ;;  %810 = vmatprep.mubr.bf16.mxu1 %v1900_v3 }
  0xc9   : > { %1748 = vmatmul.mubr.msk.bf16.gmra.mrb[8].mxu0 %vm620_vm0, %v1826_v13  ;;  %1756 = vmatmul.mubr.msk.bf16.gmra.mrb[8].mxu1 %vm620_vm0, %v1826_v13  ;;  %v1006_v13 = vpop.permute.xlu1 %1005 }
  0xca   : > { %707 = vmatprep.mubr.bf16.mxu0 %v1900_v3  ;;  %820 = vmatprep.mubr.bf16.mxu1 %v1900_v3 }
  0xd1   : > { %1749 = vmatmul.mubr.msk.bf16.gmra.mrb[12].mxu0 %vm620_vm0, %v1827_v14  ;;  %1757 = vmatmul.mubr.msk.bf16.gmra.mrb[12].mxu1 %vm620_vm0, %v1827_v14 }
  0xd2   : > { %717 = vmatprep.mubr.bf16.mxu0 %v1900_v3  ;;  %830 = vmatprep.mubr.bf16.mxu1 %v1900_v3 }
  0xd9   : > { %1750 = vmatmul.mubr.msk.bf16.gmra.mrb[16].mxu0 %vm620_vm0, %v1828_v15  ;;  %1758 = vmatmul.mubr.msk.bf16.gmra.mrb[16].mxu1 %vm620_vm0, %v1828_v15 }
  0xda   : > { %727 = vmatprep.mubr.bf16.mxu0 %v1900_v3  ;;  %840 = vmatprep.mubr.bf16.mxu1 %v1900_v3 }
  0xe1   : > { %1751 = vmatmul.mubr.msk.bf16.gmra.mrb[20].mxu0 %vm620_vm0, %v1829_v16  ;;  %1759 = vmatmul.mubr.msk.bf16.gmra.mrb[20].mxu1 %vm620_vm0, %v1829_v16 }
  0xe2   : > { %737 = vmatprep.mubr.bf16.mxu0 %v1900_v3  ;;  %850 = vmatprep.mubr.bf16.mxu1 %v1900_v3 }
  0xe9   : > { %1752 = vmatmul.mubr.msk.bf16.gmra.mrb[24].mxu0 %vm620_vm0, %v1830_v17  ;;  %1760 = vmatmul.mubr.msk.bf16.gmra.mrb[24].mxu1 %vm620_vm0, %v1830_v17 }
  0xea   : > { %747 = vmatprep.mubr.bf16.mxu0 %v1900_v3  ;;  %860 = vmatprep.mubr.bf16.mxu1 %v1900_v3 }
  0xf1   : > { %1753 = vmatmul.mubr.msk.bf16.gmra.mrb[28].mxu0 %vm620_vm0, %v1831_v18  ;;  %1761 = vmatmul.mubr.msk.bf16.gmra.mrb[28].mxu1 %vm620_vm0, %v1831_v18 }
  0xf2   : > { %1335 = vmatprep.mubr.bf16.mxu0 %v1900_v3  ;;  %1408 = vmatprep.mubr.bf16.mxu1 %v1900_v3 }
 0x18c   : > { %v679_v28 = vpop.f32.mrb[0].mxu0  ;;  %v792_v29 = vpop.f32.mrb[0].mxu1 }
 0x18d   : > { %v681_v30 = vpop.f32.mrb[1].mxu0  ;;  %v794_v31 = vpop.f32.mrb[1].mxu1 }
 0x18e   : > { %v683_v32 = vpop.f32.mrb[2].mxu0  ;;  %v796_v35 = vpop.f32.mrb[2].mxu1 }
 0x18f   : > { %v871_v34 = vpack.c.bf16 %v683_v32, %v679_v28  ;;  %v685_v36 = vpop.f32.mrb[3].mxu0  ;;  %v873_v38 = vpack.c.bf16 %v796_v35, %v792_v29  ;;  %v798_v40 = vpop.f32.mrb[3].mxu1 }
 0x190   : > { %v872_v39 = vpack.c.bf16 %v685_v36, %v681_v30  ;;  %v874_v42 = vpack.c.bf16 %v798_v40, %v794_v31  ;;  %v994_v28 = vpop.permute.xlu0 %993  ;;  %v1014_v36 = vrot.slane %v1006_v13, %v2263_v23 }
 0x191   : > { %v1159_v41 = vadd.bf16 %v1762_v33, %v871_v34  ;;  %v1161_v43 = vadd.bf16 %v1762_v33, %v873_v38  ;;  %v1002_v37 = vrot.slane %v994_v28, %v2263_v23 }
 0x192   : > { %v1160_v44 = vadd.bf16 %v1762_v33, %v872_v39  ;;  %v1162_v47 = vadd.bf16 %v1762_v33, %v874_v42  ;;  %v1030_v39 = vpop.permute.xlu1 %1029 }
 0x193   : > { %v1191_v54 = vmax.bf16 %v1900_v3, %v1159_v41  ;;  %v1193_v62 = vmax.bf16 %v1900_v3, %v1161_v43 }
 0x194   : > { %v689_v49 = vpop.f32.mrb[4].mxu0  ;;  %v1192_v50 = vmax.bf16 %v1900_v3, %v1160_v44  ;;  %v802_v55 = vpop.f32.mrb[4].mxu1  ;;  %v1194_v57 = vmax.bf16 %v1900_v3, %v1162_v47 }
 0x195   : > { %v691_v56 = vpop.f32.mrb[5].mxu0  ;;  %v804_v63 = vpop.f32.mrb[5].mxu1 }
 0x196   : > { %v693_v58 = vpop.f32.mrb[6].mxu0  ;;  %1303 = vmatprep.subr.bf16.mxu0 %v1192_v50  ;;  %v806_v1 = vpop.f32.mrb[6].mxu1  ;;  %1376 = vmatprep.subr.bf16.mxu1 %v1194_v57 }
 0x197   : > { %v875_v60 = vpack.c.bf16 %v693_v58, %v689_v49  ;;  %v695_v59 = vpop.f32.mrb[7].mxu0  ;;  %1304 = vmatpush1.bf16.msra.mxu0 %v1191_v54  ;;  %v877_v61 = vpack.c.bf16 %v806_v1, %v802_v55  ;;  %v808_v5 = vpop.f32.mrb[7].mxu1  ;;  %1377 = vmatpush1.bf16.msra.mxu1 %v1193_v62  ;;  %v1765_v49 = vcombine.low %v1002_v37, %v1014_v36 }
 0x198   : > { %v876_v4 = vpack.c.bf16 %v695_v59, %v691_v56  ;;  %v878_v7 = vpack.c.bf16 %v808_v5, %v804_v63  ;;  %v1018_v56 = vpop.permute.xlu0 %1017  ;;  %v1038_v59 = vrot.slane %v1030_v39, %v2263_v23 }
 0x199   : > { %v1163_v6 = vadd.bf16 %v1763_v0, %v875_v60  ;;  %v1165_v8 = vadd.bf16 %v1763_v0, %v877_v61  ;;  %v1026_v2 = vrot.slane %v1018_v56, %v2263_v23 }
 0x19a   : > { %v1164_v9 = vadd.bf16 %v1763_v0, %v876_v4  ;;  %v1166_v12 = vadd.bf16 %v1763_v0, %v878_v7  ;;  %v1054_v4 = vpop.permute.xlu1 %1053 }
 0x19b   : > { %v1195_v16 = vmax.bf16 %v1900_v3, %v1163_v6  ;;  %v1197_v20 = vmax.bf16 %v1900_v3, %v1165_v8 }
 0x19c   : > { %v699_v14 = vpop.f32.mrb[8].mxu0  ;;  %v1196_v15 = vmax.bf16 %v1900_v3, %v1164_v9  ;;  %v812_v17 = vpop.f32.mrb[8].mxu1  ;;  %v1198_v19 = vmax.bf16 %v1900_v3, %v1166_v12 }
 0x19d   : > { %v701_v18 = vpop.f32.mrb[9].mxu0  ;;  %v814_v21 = vpop.f32.mrb[9].mxu1 }
 0x19e   : > { %v703_v22 = vpop.f32.mrb[10].mxu0  ;;  %1305 = vmatprep.subr.bf16.mxu0 %v1196_v15  ;;  %v816_v26 = vpop.f32.mrb[10].mxu1  ;;  %1378 = vmatprep.subr.bf16.mxu1 %v1198_v19 }
 0x19f   : > { %v879_v25 = vpack.c.bf16 %v703_v22, %v699_v14  ;;  %v705_v27 = vpop.f32.mrb[11].mxu0  ;;  %1306 = vmatpush1.bf16.msra.mxu0 %v1195_v16  ;;  %v881_v29 = vpack.c.bf16 %v816_v26, %v812_v17  ;;  %v818_v31 = vpop.f32.mrb[11].mxu1  ;;  %1379 = vmatpush1.bf16.msra.mxu1 %v1197_v20  ;;  %v1766_v14 = vcombine.low %v1026_v2, %v1038_v59 }
 0x1a0   : > { %v880_v30 = vpack.c.bf16 %v705_v27, %v701_v18  ;;  %v882_v33 = vpack.c.bf16 %v818_v31, %v814_v21  ;;  %v1042_v18 = vpop.permute.xlu0 %1041  ;;  %v1062_v27 = vrot.slane %v1054_v4, %v2263_v23 }
 0x1a1   : > { %v1167_v32 = vadd.bf16 %v1764_v24, %v879_v25  ;;  %v1169_v34 = vadd.bf16 %v1764_v24, %v881_v29  ;;  %v1050_v28 = vrot.slane %v1042_v18, %v2263_v23 }
 0x1a2   : > { %v1168_v35 = vadd.bf16 %v1764_v24, %v880_v30  ;;  %v1170_v38 = vadd.bf16 %v1764_v24, %v882_v33  ;;  %v1078_v30 = vpop.permute.xlu1 %1077 }
 0x1a3   : > { %v1199_v42 = vmax.bf16 %v1900_v3, %v1167_v32  ;;  %v1201_v46 = vmax.bf16 %v1900_v3, %v1169_v34 }
 0x1a4   : > { %v709_v40 = vpop.f32.mrb[12].mxu0  ;;  %v1200_v41 = vmax.bf16 %v1900_v3, %v1168_v35  ;;  %v822_v43 = vpop.f32.mrb[12].mxu1  ;;  %v1202_v45 = vmax.bf16 %v1900_v3, %v1170_v38 }
 0x1a5   : > { %v711_v44 = vpop.f32.mrb[13].mxu0  ;;  %v824_v47 = vpop.f32.mrb[13].mxu1 }
 0x1a6   : > { %v713_v48 = vpop.f32.mrb[14].mxu0  ;;  %1307 = vmatprep.subr.bf16.mxu0 %v1200_v41  ;;  %v826_v54 = vpop.f32.mrb[14].mxu1  ;;  %1380 = vmatprep.subr.bf16.mxu1 %v1202_v45 }
 0x1a7   : > { %v883_v50 = vpack.c.bf16 %v713_v48, %v709_v40  ;;  %v715_v55 = vpop.f32.mrb[15].mxu0  ;;  %1308 = vmatpush1.bf16.msra.mxu0 %v1199_v42  ;;  %v885_v57 = vpack.c.bf16 %v826_v54, %v822_v43  ;;  %v828_v63 = vpop.f32.mrb[15].mxu1  ;;  %1381 = vmatpush1.bf16.msra.mxu1 %v1201_v46  ;;  %v1767_v40 = vcombine.low %v1050_v28, %v1062_v27 }
 0x1a8   : > { %v884_v62 = vpack.c.bf16 %v715_v55, %v711_v44  ;;  %v886_v0 = vpack.c.bf16 %v828_v63, %v824_v47  ;;  %v1066_v44 = vpop.permute.xlu0 %1065  ;;  %v1086_v55 = vrot.slane %v1078_v30, %v2263_v23 }
 0x1a9   : > { %v1171_v58 = vadd.bf16 %v1765_v49, %v883_v50  ;;  %v1173_v60 = vadd.bf16 %v1765_v49, %v885_v57  ;;  %v1074_v56 = vrot.slane %v1066_v44, %v2263_v23 }
 0x1aa   : > { %v1172_v1 = vadd.bf16 %v1765_v49, %v884_v62  ;;  %v1174_v61 = vadd.bf16 %v1765_v49, %v886_v0  ;;  %v1102_v62 = vpop.permute.xlu1 %1101 }
 0x1ab   : > { %v1203_v7 = vmax.bf16 %v1900_v3, %v1171_v58  ;;  %v1205_v11 = vmax.bf16 %v1900_v3, %v1173_v60 }
 0x1ac   : > { %v719_v5 = vpop.f32.mrb[16].mxu0  ;;  %v1204_v6 = vmax.bf16 %v1900_v3, %v1172_v1  ;;  %v832_v8 = vpop.f32.mrb[16].mxu1  ;;  %v1206_v10 = vmax.bf16 %v1900_v3, %v1174_v61 }
 0x1ad   : > { %v721_v9 = vpop.f32.mrb[17].mxu0  ;;  %v834_v12 = vpop.f32.mrb[17].mxu1 }
 0x1ae   : > { %v723_v13 = vpop.f32.mrb[18].mxu0  ;;  %1309 = vmatprep.subr.bf16.mxu0 %v1204_v6  ;;  %v836_v16 = vpop.f32.mrb[18].mxu1  ;;  %1382 = vmatprep.subr.bf16.mxu1 %v1206_v10 }
 0x1af   : > { %v887_v15 = vpack.c.bf16 %v723_v13, %v719_v5  ;;  %v725_v17 = vpop.f32.mrb[19].mxu0  ;;  %1310 = vmatpush1.bf16.msra.mxu0 %v1203_v7  ;;  %v889_v19 = vpack.c.bf16 %v836_v16, %v832_v8  ;;  %v838_v21 = vpop.f32.mrb[19].mxu1  ;;  %1383 = vmatpush1.bf16.msra.mxu1 %v1205_v11  ;;  %v1768_v5 = vcombine.low %v1074_v56, %v1086_v55 }
 0x1b0   : > { %v888_v20 = vpack.c.bf16 %v725_v17, %v721_v9  ;;  %v890_v24 = vpack.c.bf16 %v838_v21, %v834_v12  ;;  %v1090_v9 = vpop.permute.xlu0 %1089  ;;  %v1110_v17 = vrot.slane %v1102_v62, %v2263_v23 }
 0x1b1   : > { %v1175_v22 = vadd.bf16 %v1766_v14, %v887_v15  ;;  %v1177_v25 = vadd.bf16 %v1766_v14, %v889_v19  ;;  %v1098_v18 = vrot.slane %v1090_v9, %v2263_v23 }
 0x1b2   : > { %v1176_v26 = vadd.bf16 %v1766_v14, %v888_v20  ;;  %v1178_v29 = vadd.bf16 %v1766_v14, %v890_v24 }
 0x1b3   : > { %v1207_v33 = vmax.bf16 %v1900_v3, %v1175_v22  ;;  %v1209_v37 = vmax.bf16 %v1900_v3, %v1177_v25  ;;  %v1769_v30 = vcombine.low %v1098_v18, %v1110_v17 }
 0x1b4   : > { %v729_v31 = vpop.f32.mrb[20].mxu0  ;;  %v1208_v32 = vmax.bf16 %v1900_v3, %v1176_v26  ;;  %v842_v34 = vpop.f32.mrb[20].mxu1  ;;  %v1210_v36 = vmax.bf16 %v1900_v3, %v1178_v29 }
 0x1b5   : > { %v731_v35 = vpop.f32.mrb[21].mxu0  ;;  %v844_v38 = vpop.f32.mrb[21].mxu1 }
 0x1b6   : > { %v733_v39 = vpop.f32.mrb[22].mxu0  ;;  %1311 = vmatprep.subr.bf16.mxu0 %v1208_v32  ;;  %v846_v42 = vpop.f32.mrb[22].mxu1  ;;  %1384 = vmatprep.subr.bf16.mxu1 %v1210_v36 }
 0x1b7   : > { %v891_v41 = vpack.c.bf16 %v733_v39, %v729_v31  ;;  %v735_v43 = vpop.f32.mrb[23].mxu0  ;;  %1312 = vmatpush1.bf16.msra.mxu0 %v1207_v33  ;;  %v893_v45 = vpack.c.bf16 %v846_v42, %v842_v34  ;;  %v848_v47 = vpop.f32.mrb[23].mxu1  ;;  %1385 = vmatpush1.bf16.msra.mxu1 %v1209_v37 }
 0x1b8   : > { %v892_v46 = vpack.c.bf16 %v735_v43, %v731_v35  ;;  %v894_v49 = vpack.c.bf16 %v848_v47, %v844_v38  ;;  %v1834_v47 = vld [vmem:[%s2411_s5 + $0x10] sm:$0xff]  }
 0x1b9   : > { %v1179_v48 = vadd.bf16 %v1767_v40, %v891_v41  ;;  %v1181_v50 = vadd.bf16 %v1767_v40, %v893_v45  ;;  %v1832_v45 = vld [vmem:[%s2411_s5] sm:$0xff]  }
 0x1ba   : > { %v1180_v54 = vadd.bf16 %v1767_v40, %v892_v46  ;;  %v1182_v57 = vadd.bf16 %v1767_v40, %v894_v49  ;;  %v1833_v46 = vld [vmem:[%s2411_s5 + $0x8] sm:$0xff]   ;;  %v1247_v49 = vpop.permute.xlu1 %1246 }
 0x1bb   : > { %v1211_v0 = vmax.bf16 %v1900_v3, %v1179_v48  ;;  %v1213_v2 = vmax.bf16 %v1900_v3, %v1181_v50  ;;  %v1835_v48 = vld [vmem:[%s2411_s5 + $0x18] sm:$0xff]   ;;  %v1242_v50 = vpop.permute.xlu0 %1241 }
 0x1bc   : > { %v739_v63 = vpop.f32.mrb[24].mxu0  ;;  %v1212_v58 = vmax.bf16 %v1900_v3, %v1180_v54  ;;  %v852_v60 = vpop.f32.mrb[24].mxu1  ;;  %v1214_v59 = vmax.bf16 %v1900_v3, %v1182_v57 }
 0x1bd   : > { %v741_v1 = vpop.f32.mrb[25].mxu0  ;;  %v854_v61 = vpop.f32.mrb[25].mxu1 }
 0x1be   : > { %v743_v4 = vpop.f32.mrb[26].mxu0  ;;  %1313 = vmatprep.subr.bf16.mxu0 %v1212_v58  ;;  %v856_v7 = vpop.f32.mrb[26].mxu1  ;;  %1386 = vmatprep.subr.bf16.mxu1 %v1214_v59 }
 0x1bf   : > { %v895_v6 = vpack.c.bf16 %v743_v4, %v739_v63  ;;  %v745_v8 = vpop.f32.mrb[27].mxu0  ;;  %1314 = vmatpush1.bf16.msra.mxu0 %v1211_v0  ;;  %v897_v10 = vpack.c.bf16 %v856_v7, %v852_v60  ;;  %v858_v12 = vpop.f32.mrb[27].mxu1  ;;  %1387 = vmatpush1.bf16.msra.mxu1 %v1213_v2 }
 0x1c0   : > { %v896_v11 = vpack.c.bf16 %v745_v8, %v741_v1  ;;  %v898_v14 = vpack.c.bf16 %v858_v12, %v854_v61  ;;  %v2331_v54 = vpop.permute.xlu1 %1256  ;;  %v1252_v55 = vpop.permute.xlu0 %1251 }
 0x1c1   : > { %v1183_v13 = vadd.bf16 %v1768_v5, %v895_v6  ;;  %v1185_v15 = vadd.bf16 %v1768_v5, %v897_v10 }
 0x1c2   : > { %v1184_v16 = vadd.bf16 %v1768_v5, %v896_v11  ;;  %v1186_v19 = vadd.bf16 %v1768_v5, %v898_v14 }
 0x1c3   : > { %v1215_v22 = vmax.bf16 %v1900_v3, %v1183_v13  ;;  %v1217_v27 = vmax.bf16 %v1900_v3, %v1185_v15 }
 0x1c4   : > { %v749_v20 = vpop.f32.mrb[28].mxu0  ;;  %v1216_v21 = vmax.bf16 %v1900_v3, %v1184_v16  ;;  %v862_v24 = vpop.f32.mrb[28].mxu1  ;;  %v1218_v26 = vmax.bf16 %v1900_v3, %v1186_v19 }
 0x1c5   : > { %v751_v25 = vpop.f32.mrb[29].mxu0  ;;  %v864_v28 = vpop.f32.mrb[29].mxu1 }
 0x1c6   : > { %v753_v29 = vpop.f32.mrb[30].mxu0  ;;  %1315 = vmatprep.subr.bf16.mxu0 %v1216_v21  ;;  %v866_v32 = vpop.f32.mrb[30].mxu1  ;;  %1388 = vmatprep.subr.bf16.mxu1 %v1218_v26 }
 0x1c7   : > { %v899_v31 = vpack.c.bf16 %v753_v29, %v749_v20  ;;  %v755_v23 = vpop.f32.mrb[31].mxu0  ;;  %1316 = vmatpush1.bf16.msra.mxu0 %v1215_v22  ;;  %v901_v33 = vpack.c.bf16 %v866_v32, %v862_v24  ;;  %v868_v35 = vpop.f32.mrb[31].mxu1  ;;  %1389 = vmatpush1.bf16.msra.mxu1 %v1217_v27 }
 0x1c8   : > { %v900_v34 = vpack.c.bf16 %v755_v23, %v751_v25  ;;  %v902_v37 = vpack.c.bf16 %v868_v35, %v864_v28  ;;  %v1497_v56 = vpop.permute.xlu1 %1496  ;;  %v1492_v57 = vpop.permute.xlu0 %1491 }
 0x1c9   : > { %v1187_v36 = vadd.bf16 %v1769_v30, %v899_v31  ;;  %v1189_v38 = vadd.bf16 %v1769_v30, %v901_v33 }
 0x1ca   : > { %v1188_v39 = vadd.bf16 %v1769_v30, %v900_v34  ;;  %v1190_v40 = vadd.bf16 %v1769_v30, %v902_v37 }
 0x1cb   : > { %v1219_v42 = vmax.bf16 %v1900_v3, %v1187_v36  ;;  %v1221_v44 = vmax.bf16 %v1900_v3, %v1189_v38 }
 0x1cc   : > { %v1220_v41 = vmax.bf16 %v1900_v3, %v1188_v39  ;;  %v1222_v43 = vmax.bf16 %v1900_v3, %v1190_v40  ;;  %v2333_v62 = vpop.permute.xlu1 %1501  ;;  %v2335_v63 = vpop.permute.xlu0 %1261 }
 0x1ce   : > { %1317 = vmatprep.subr.bf16.mxu0 %v1220_v41  ;;  %1390 = vmatprep.subr.bf16.mxu1 %v1222_v43 }
 0x1cf   : > { %1318 = vmatpush1.bf16.msra.mxu0 %v1219_v42  ;;  %1391 = vmatpush1.bf16.msra.mxu1 %v1221_v44 }
 0x1d0   : > { %v1507_v19 = vpop.permute.xlu1 %1506  ;;  %v2337_v24 = vpop.permute.xlu0 %1266 }
 0x1d2   : > { %1336 = vmatmul.mubr.bf16.vlgmr.msra.gmra.mrb[32].mxu0 %v1832_v45  ;;  %1409 = vmatmul.mubr.bf16.vlgmr.msra.gmra.mrb[32].mxu1 %v1832_v45 }
 0x1d3   : > { %1345 = vmatprep.mubr.bf16.mxu0 %v1900_v3  ;;  %1418 = vmatprep.mubr.bf16.mxu1 %v1900_v3 }
 0x1da   : > { %1346 = vmatmul.mubr.bf16.gmra.mrb[36].mxu0 %v1833_v46  ;;  %1419 = vmatmul.mubr.bf16.gmra.mrb[36].mxu1 %v1833_v46 }
 0x1db   : > { %1355 = vmatprep.mubr.bf16.mxu0 %v1900_v3  ;;  %1428 = vmatprep.mubr.bf16.mxu1 %v1900_v3 }
 0x1e2   : > { %1356 = vmatmul.mubr.bf16.gmra.mrb[40].mxu0 %v1834_v47  ;;  %1429 = vmatmul.mubr.bf16.gmra.mrb[40].mxu1 %v1834_v47 }
 0x1e3   : > { %1365 = vmatprep.mubr.bf16.mxu0 %v1900_v3  ;;  %1438 = vmatprep.mubr.bf16.mxu1 %v1900_v3 }
 0x1ea   : > { %1366 = vmatmul.mubr.bf16.gmra.mrb[44].mxu0 %v1835_v48  ;;  %1439 = vmatmul.mubr.bf16.gmra.mrb[44].mxu1 %v1835_v48 }
 0x2a5   : > { %v1337_v58 = vpop.f32.mrb[32].mxu0  ;;  %v1410_v3 = vpop.f32.mrb[32].mxu1 }
 0x2a6   : > { %v1338_v0 = vadd.f32 %v1337_v58, %v1242_v50  ;;  %v1339_v60 = vpop.f32.mrb[33].mxu0  ;;  %v1411_v1 = vadd.f32 %v1410_v3, %v1242_v50  ;;  %v1412_v2 = vpop.f32.mrb[33].mxu1 }
 0x2a7   : > { %v1340_v59 = vadd.f32 %v1339_v60, %v1242_v50  ;;  %v1341_v61 = vpop.f32.mrb[34].mxu0  ;;  %v1413_v5 = vadd.f32 %v1412_v2, %v1242_v50  ;;  %v1414_v7 = vpop.f32.mrb[34].mxu1 }
 0x2a8   : > { %v1449_v4 = vmax.f32 %v1338_v0, 0.0  ;;  %v1342_v6 = vadd.f32 %v1341_v61, %v1247_v49  ;;  %v1343_v8 = vpop.f32.mrb[35].mxu0  ;;  %v1451_v9 = vmax.f32 %v1411_v1, 0.0  ;;  %v1415_v11 = vadd.f32 %v1414_v7, %v1247_v49  ;;  %v1416_v13 = vpop.f32.mrb[35].mxu1 }
 0x2a9   : > { %v1450_v10 = vmax.f32 %v1340_v59, 0.0  ;;  %v1344_v12 = vadd.f32 %v1343_v8, %v1247_v49  ;;  %v1452_v14 = vmax.f32 %v1413_v5, 0.0  ;;  %v1417_v16 = vadd.f32 %v1416_v13, %v1247_v49  ;;  %v1512_v2 = vpop.permute.xlu1 %1511  ;;  %v1272_v7 = vpop.permute.xlu0 %1271 }
 0x2aa   : > { %v1453_v15 = vmax.f32 %v1342_v6, 0.0  ;;  %v1455_v17 = vmax.f32 %v1415_v11, 0.0  ;;  %v1529_v20 = vmul.f32 %v1492_v57, %v1449_v4  ;;  %v1531_v25 = vmul.f32 %v1492_v57, %v1451_v9 }
 0x2ab   : > { %v1454_v18 = vmax.f32 %v1344_v12, 0.0  ;;  %v1456_v22 = vmax.f32 %v1417_v16, 0.0  ;;  %v1530_v26 = vmul.f32 %v1492_v57, %v1450_v10  ;;  %v1532_v30 = vmul.f32 %v1492_v57, %v1452_v14 }
 0x2ac   : > { %v1533_v21 = vmul.f32 %v1497_v56, %v1453_v15  ;;  %v1535_v27 = vmul.f32 %v1497_v56, %v1455_v17 }
 0x2ad   : > { %v1534_v28 = vmul.f32 %v1497_v56, %v1454_v18  ;;  %v1347_v29 = vpop.f32.mrb[36].mxu0  ;;  %v1536_v32 = vmul.f32 %v1497_v56, %v1456_v22  ;;  %v1420_v33 = vpop.f32.mrb[36].mxu1 }
 0x2ae   : > { %v1561_v31 = vadd.f32 %v1533_v21, %v1529_v20  ;;  %v1348_v23 = vadd.f32 %v1347_v29, %v1252_v55  ;;  %v1349_v34 = vpop.f32.mrb[37].mxu0  ;;  %v1587_v35 = vadd.f32 %v1535_v27, %v1531_v25  ;;  %v1421_v37 = vadd.f32 %v1420_v33, %v1252_v55  ;;  %v1422_v39 = vpop.f32.mrb[37].mxu1 }
 0x2af   : > { %v1574_v36 = vadd.f32 %v1534_v28, %v1530_v26  ;;  %v1350_v38 = vadd.f32 %v1349_v34, %v1252_v55  ;;  %v1351_v40 = vpop.f32.mrb[38].mxu0  ;;  %v1600_v41 = vadd.f32 %v1536_v32, %v1532_v30  ;;  %v1423_v43 = vadd.f32 %v1422_v39, %v1252_v55  ;;  %v1424_v45 = vpop.f32.mrb[38].mxu1 }
 0x2b0   : > { %v1457_v42 = vmax.f32 %v1348_v23, 0.0  ;;  %v1352_v44 = vadd.f32 %v1351_v40, %v2331_v54  ;;  %v1353_v46 = vpop.f32.mrb[39].mxu0  ;;  %v1459_v47 = vmax.f32 %v1421_v37, 0.0  ;;  %v1425_v49 = vadd.f32 %v1424_v45, %v2331_v54  ;;  %v1426_v56 = vpop.f32.mrb[39].mxu1 }
 0x2b1   : > { %v1458_v48 = vmax.f32 %v1350_v38, 0.0  ;;  %v1354_v50 = vadd.f32 %v1353_v46, %v2331_v54  ;;  %v1460_v58 = vmax.f32 %v1423_v43, 0.0  ;;  %v1427_v3 = vadd.f32 %v1426_v56, %v2331_v54  ;;  %v1517_v39 = vpop.permute.xlu1 %1516  ;;  %v1277_v40 = vpop.permute.xlu0 %1276 }
 0x2b2   : > { %v1537_v57 = vmul.f32 %v2333_v62, %v1457_v42  ;;  %v1461_v0 = vmax.f32 %v1352_v44, 0.0  ;;  %v1539_v60 = vmul.f32 %v2333_v62, %v1459_v47  ;;  %v1463_v1 = vmax.f32 %v1425_v49, 0.0 }
 0x2b3   : > { %v1538_v55 = vmul.f32 %v2333_v62, %v1458_v48  ;;  %v1462_v59 = vmax.f32 %v1354_v50, 0.0  ;;  %v1540_v4 = vmul.f32 %v2333_v62, %v1460_v58  ;;  %v1464_v6 = vmax.f32 %v1427_v3, 0.0 }
 0x2b4   : > { %v1562_v61 = vadd.f32 %v1561_v31, %v1537_v57  ;;  %v1541_v5 = vmul.f32 %v1507_v19, %v1461_v0  ;;  %v1588_v8 = vadd.f32 %v1587_v35, %v1539_v60  ;;  %v1543_v10 = vmul.f32 %v1507_v19, %v1463_v1 }
 0x2b5   : > { %v1575_v9 = vadd.f32 %v1574_v36, %v1538_v55  ;;  %v1542_v11 = vmul.f32 %v1507_v19, %v1462_v59  ;;  %v1357_v12 = vpop.f32.mrb[40].mxu0  ;;  %v1601_v13 = vadd.f32 %v1600_v41, %v1540_v4  ;;  %v1544_v14 = vmul.f32 %v1507_v19, %v1464_v6  ;;  %v1430_v16 = vpop.f32.mrb[40].mxu1 }
 0x2b6   : > { %v1563_v54 = vadd.f32 %v1562_v61, %v1541_v5  ;;  %v1358_v15 = vadd.f32 %v1357_v12, %v2335_v63  ;;  %v1359_v17 = vpop.f32.mrb[41].mxu0  ;;  %v1589_v18 = vadd.f32 %v1588_v8, %v1543_v10  ;;  %v1431_v21 = vadd.f32 %v1430_v16, %v2335_v63  ;;  %v1432_v22 = vpop.f32.mrb[41].mxu1 }
 0x2b7   : > { %v1576_v20 = vadd.f32 %v1575_v9, %v1542_v11  ;;  %v1360_v62 = vadd.f32 %v1359_v17, %v2335_v63  ;;  %v1361_v25 = vpop.f32.mrb[42].mxu0  ;;  %v1602_v26 = vadd.f32 %v1601_v13, %v1544_v14  ;;  %v1433_v28 = vadd.f32 %v1432_v22, %v2335_v63  ;;  %v1434_v30 = vpop.f32.mrb[42].mxu1 }
 0x2b8   : > { %v1465_v27 = vmax.f32 %v1358_v15, 0.0  ;;  %v1362_v29 = vadd.f32 %v1361_v25, %v2337_v24  ;;  %v1363_v19 = vpop.f32.mrb[43].mxu0  ;;  %v1467_v31 = vmax.f32 %v1431_v21, 0.0  ;;  %v1435_v23 = vadd.f32 %v1434_v30, %v2337_v24  ;;  %v1436_v34 = vpop.f32.mrb[43].mxu1 }
 0x2b9   : > { %v1466_v32 = vmax.f32 %v1360_v62, 0.0  ;;  %v1364_v33 = vadd.f32 %v1363_v19, %v2337_v24  ;;  %v1468_v36 = vmax.f32 %v1433_v28, 0.0  ;;  %v1437_v38 = vadd.f32 %v1436_v34, %v2337_v24  ;;  %v1522_v13 = vpop.permute.xlu0 %1521  ;;  %v1527_v22 = vpop.permute.xlu1 %1526 }
 0x2ba   : > { %v1545_v35 = vmul.f32 %v1512_v2, %v1465_v27  ;;  %v1469_v37 = vmax.f32 %v1362_v29, 0.0  ;;  %v1547_v41 = vmul.f32 %v1512_v2, %v1467_v31  ;;  %v1471_v42 = vmax.f32 %v1435_v23, 0.0 }
 0x2bb   : > { %v1546_v63 = vmul.f32 %v1512_v2, %v1466_v32  ;;  %v1470_v43 = vmax.f32 %v1364_v33, 0.0  ;;  %v1548_v45 = vmul.f32 %v1512_v2, %v1468_v36  ;;  %v1472_v47 = vmax.f32 %v1437_v38, 0.0 }
 0x2bc   : > { %v1564_v44 = vadd.f32 %v1563_v54, %v1545_v35  ;;  %v1549_v46 = vmul.f32 %v1517_v39, %v1469_v37  ;;  %v1590_v48 = vadd.f32 %v1589_v18, %v1547_v41  ;;  %v1551_v50 = vmul.f32 %v1517_v39, %v1471_v42 }
 0x2bd   : > { %v1577_v49 = vadd.f32 %v1576_v20, %v1546_v63  ;;  %v1550_v56 = vmul.f32 %v1517_v39, %v1470_v43  ;;  %v1367_v57 = vpop.f32.mrb[44].mxu0  ;;  %v1603_v58 = vadd.f32 %v1602_v26, %v1548_v45  ;;  %v1552_v3 = vmul.f32 %v1517_v39, %v1472_v47  ;;  %v1440_v24 = vpop.f32.mrb[44].mxu1 }
 0x2be   : > { %v1565_v0 = vadd.f32 %v1564_v44, %v1549_v46  ;;  %v1368_v60 = vadd.f32 %v1367_v57, %v1272_v7  ;;  %v1369_v55 = vpop.f32.mrb[45].mxu0  ;;  %v1591_v1 = vadd.f32 %v1590_v48, %v1551_v50  ;;  %v1441_v61 = vadd.f32 %v1440_v24, %v1272_v7  ;;  %v1442_v5 = vpop.f32.mrb[45].mxu1 }
 0x2bf   : > { %v1578_v59 = vadd.f32 %v1577_v49, %v1550_v56  ;;  %v1370_v4 = vadd.f32 %v1369_v55, %v1272_v7  ;;  %v1371_v6 = vpop.f32.mrb[46].mxu0  ;;  %v1604_v2 = vadd.f32 %v1603_v58, %v1552_v3  ;;  %v1443_v9 = vadd.f32 %v1442_v5, %v1272_v7  ;;  %v1444_v11 = vpop.f32.mrb[46].mxu1 }
 0x2c0   : > { %v1473_v8 = vmax.f32 %v1368_v60, 0.0  ;;  %v1372_v10 = vadd.f32 %v1371_v6, %v1277_v40  ;;  %v1373_v12 = vpop.f32.mrb[47].mxu0  ;;  %v1475_v54 = vmax.f32 %v1441_v61, 0.0  ;;  %v1445_v15 = vadd.f32 %v1444_v11, %v1277_v40  ;;  %v1446_v17 = vpop.f32.mrb[47].mxu1 }
 0x2c1   : > { %v1474_v14 = vmax.f32 %v1370_v4, 0.0  ;;  %v1374_v16 = vadd.f32 %v1373_v12, %v1277_v40  ;;  %v1476_v20 = vmax.f32 %v1443_v9, 0.0  ;;  %v1447_v62 = vadd.f32 %v1446_v17, %v1277_v40 }
 0x2c2   : > { %v1553_v18 = vmul.f32 %v1522_v13, %v1473_v8  ;;  %v1477_v21 = vmax.f32 %v1372_v10, 0.0  ;;  %v1555_v25 = vmul.f32 %v1522_v13, %v1475_v54  ;;  %v1479_v27 = vmax.f32 %v1445_v15, 0.0 }
 0x2c3   : > { %v1554_v26 = vmul.f32 %v1522_v13, %v1474_v14  ;;  %v1478_v28 = vmax.f32 %v1374_v16, 0.0  ;;  %v1556_v7 = vmul.f32 %v1522_v13, %v1476_v20  ;;  %v1480_v19 = vmax.f32 %v1447_v62, 0.0 }
 0x2c4   : > { %v1566_v29 = vadd.f32 %v1565_v0, %v1553_v18  ;;  %v1557_v30 = vmul.f32 %v1527_v22, %v1477_v21  ;;  %v1592_v31 = vadd.f32 %v1591_v1, %v1555_v25  ;;  %v1559_v23 = vmul.f32 %v1527_v22, %v1479_v27  ;;  %v1617_v0 = vpop.permute.xlu0 %1616 }
 0x2c5   : > { %v1579_v32 = vadd.f32 %v1578_v59, %v1554_v26  ;;  %v1558_v33 = vmul.f32 %v1527_v22, %v1478_v28  ;;  %v1605_v34 = vadd.f32 %v1604_v2, %v1556_v7  ;;  %v1560_v36 = vmul.f32 %v1527_v22, %v1480_v19 }
 0x2c6   : > { %v1567_v35 = vadd.f32 %v1566_v29, %v1557_v30  ;;  %v1593_v37 = vadd.f32 %v1592_v31, %v1559_v23  ;;  %v1902_v50 = vmov 1966171168   ;;  %v1622_v4 = vrot.slane %v1617_v0, %v386_v53 }
 0x2c7   : > { %v1580_v38 = vadd.f32 %v1579_v32, %v1558_v33  ;;  %v1606_v40 = vadd.f32 %v1605_v34, %v1560_v36  ;;  %v1634_v56 = vunpack.c.l.s4 %v1902_v50 }
 0x2c8   : > { %v1568_v39 = vrot.slane %v1567_v35, 4  ;;  %v1594_v41 = vrot.slane %v1593_v37, 4 }
 0x2c9   : > { %v1581_v63 = vrot.slane %v1580_v38, 4  ;;  %v1607_v43 = vrot.slane %v1606_v40, 4  ;;  %v1635_v61 = vunpack.c.0.s8 %v1634_v56 }
 0x2ca   : > { %v1569_v42 = vadd.f32 %v1568_v39, %v1567_v35  ;;  %v1595_v44 = vadd.f32 %v1594_v41, %v1593_v37 }
 0x2cb   : > { %v1582_v45 = vadd.f32 %v1581_v63, %v1580_v38  ;;  %v1608_v47 = vadd.f32 %v1607_v43, %v1606_v40  ;;  %v1638_v13 = vsub.s32 %v1635_v61, %v2155_v52 }
 0x2cc   : > { %v1570_v46 = vrot.slane %v1569_v42, 2  ;;  %v1596_v48 = vrot.slane %v1595_v44, 2 }
 0x2cd   : > { %v1583_v49 = vrot.slane %v1582_v45, 2  ;;  %v1609_v58 = vrot.slane %v1608_v47, 2 }
 0x2ce   : > { %v1571_v57 = vadd.f32 %v1570_v46, %v1569_v42  ;;  %v1597_v3 = vadd.f32 %v1596_v48, %v1595_v44 }
 0x2cf   : > { %v1584_v60 = vadd.f32 %v1583_v49, %v1582_v45  ;;  %v1610_v55 = vadd.f32 %v1609_v58, %v1608_v47 }
 0x2d0   : > { %v1572_v24 = vrot.slane %v1571_v57, 1  ;;  %v1598_v1 = vrot.slane %v1597_v3, 1 }
 0x2d1   : > { %v1585_v59 = vrot.slane %v1584_v60, 1  ;;  %v1611_v6 = vrot.slane %v1610_v55, 1 }
 0x2d2   : > { %v1573_v5 = vadd.f32 %v1572_v24, %v1571_v57  ;;  %v1599_v2 = vadd.f32 %v1598_v1, %v1597_v3 }
 0x2d3   : > { %v1586_v8 = vadd.f32 %v1585_v59, %v1584_v60  ;;  %v1612_v10 = vadd.f32 %v1611_v6, %v1610_v55 }
 0x2d4   : > { %v1623_v9 = vadd.f32 %v1622_v4, %v1573_v5  ;;  %v1625_v11 = vadd.f32 %v1622_v4, %v1599_v2 }
 0x2d5   : > { %v1624_v12 = vadd.f32 %v1622_v4, %v1586_v8  ;;  %v1626_v54 = vadd.f32 %v1622_v4, %v1612_v10 }
 0x2d7   : > { %v1631_v14 = vcombine.low %v1623_v9, %v1624_v12  ;;  %v1632_v15 = vcombine.low %v1625_v11, %v1626_v54 }
 0x2d9   : > { %v1639_v16 = vrot.slane %v1631_v14, %v1638_v13  ;;  %v1646_v17 = vrot.slane %v1632_v15, %v1638_v13 }
 0x2db   : > { %v1647_v53 = vcombine.low %v1639_v16, %v1646_v17 }
 0x2dd   : > { %v1654_v18 = vrot.slane %v1647_v53, %v1638_v13 }
 0x2df   : > { %1660 = vst.msk [vmem:[%s326_s15] sm:$0xf] %vm1658_vm1, %v1654_v18 }
 0x2e0   : > { %1849 = shalt.err (!%p1846_p3)
}
 0x2e1   : > { %s1850_s28 = scalar_lea.hbm %s2364_s23, 64  ;;  %s1854_s10 = scalar_lea.hbm %s2415_s9, 128 }
 0x2e2   : > { %p1851_p4 = scmp.ne.s32.totalorder %s2364_s23, %s1850_s28  ;;  %p1855_p9 = scmp.lt.u32.totalorder %s2364_s23, %s2415_s9 }
 0x2e3   : > { %p1856_p10 = scmp.lt.u32.totalorder %s1854_s10, %s1850_s28  ;;  %p1858_p12 = scmp.lt.u32.totalorder %s1850_s28, %s2364_s23 }
 0x2e4   : > { %p1852_p7 = pnand %p1851_p4, %p1995_p5 }
 0x2e5   : > { %p1857_p11 = por %p1856_p10, %p1855_p9 }
 0x2e6   : > { %p1853_p8 = pneg %p1852_p7 }
 0x2e7   : > { %p1859_p13 = por %p1858_p12, %p1857_p11 }
 0x2e9   : > { %p1860_p0 = pnand %p1859_p13, %p1853_p8 }
 0x2eb   : > { %1863 = shalt.err (!%p1860_p0)
}
 0x2ec   : > { %1780 = dma.vmem_to_hbm [thread:$0]  (%p1995_p5), %s2366_s17, 64, %s2364_s23, %s1662_s24  }
 0x2ed PF: > { %p1786_p1 = scmp.ge.s32.totalorder %s1898_s14, 2  ;;  %s1688_s22 = sand.u32 1, %s1886_s11  }
 0x2ee   : > { %s1689_s25 = scalar_lea.sflag [#allocation4], %s1688_s22 }
 0x2ef   : > { %p1783_p2 = pnand %p1786_p1, %p1999_p6 }
 0x2f1   : > { %1881 = dma.done.wait (!%p1783_p2), %s1689_s25, 64  }
 0x2f2   : > { %1883 = vsyncadd (!%p1783_p2), %s1689_s25, 4294967232  ;;  %p21_p3 = scmp.ge.s32.totalorder %s1982_s16, 4   ;;  %s2418_s11 = smov %s1890_s12 }
 0x2f3   : > { %s2419_s12 = smov %s1894_s13  ;;  %s2420_s13 = smov %s1993_s19 }
 0x2f4   : > { %s2421_s14 = smov %s1982_s16  ;;  %23 = sbr.rel (!%p21_p3) target bundleno = 6 (0x6), region = 91 }
 0x2fb   :  { %1694 = vsyncpa [#allocation4], 1 }
 0x2fc   :  { %1696 = vsyncpa [#allocation4 + $0x1], 1 }

</bundles_post_ra>
